<compile_context>
chip_gen: v7x
topology: tpu7x:2x2x1
jax: 0.10.0
libtpu: 0.0.40
codegen_flags: <defaults>
</compile_context>

<pallas_src>
import functools

import jax
import jax.numpy as jnp
from jax.experimental import pallas as pl
from jax.experimental.pallas import tpu as pltpu

# ---------------------------------------------------------------------------
# model dims (small, deterministic)
# ---------------------------------------------------------------------------
N, CIN, H, W = 2, 3, 16, 16       # batch, in-channels, spatial
COUT = 32                         # backbone feature channels
NUM_CLASSES = 5                   # FocalLoss(5, ...)
HW = H * W
NHW = N * HW                      # 512 rows of the im2col matrix
K_RAW = 9 * CIN                   # 27  (3x3 taps * CIN)
KPAD = 128                        # contraction dim padded to full lane width / MXU depth


# ---------------------------------------------------------------------------
# Fused kernel bodies
# ---------------------------------------------------------------------------
def _backbone_compute(xcols_ref, wc_ref, bc_ref, pool_ref, wfc_ref, bfc_ref):
    # conv3x3 as ONE im2col matmul: (NHW, KPAD) @ (KPAD, COUT), bf16 in, f32 acc
    y = jnp.dot(xcols_ref[...], wc_ref[...], preferred_element_type=jnp.float32)
    y = jnp.maximum(y + bc_ref[...], 0.0)                    # bias + ReLU, stays on-chip
    # global average pool as a matmul with the (N, NHW) block-diagonal 1/HW matrix
    feat = jnp.dot(pool_ref[...], y, preferred_element_type=jnp.float32)   # (N, COUT)
    logits = (jnp.dot(feat, wfc_ref[...], preferred_element_type=jnp.float32)
              + bfc_ref[...])                                               # (N, 5)
    return feat, logits


def _focal_loss(logits, onehot, alpha):
    # FL = mean_i[ -alpha_t * (1 - p_t)^5 * log(p_t) ]
    m = jnp.max(logits, axis=-1, keepdims=True)
    z = logits - m
    lse = jnp.log(jnp.sum(jnp.exp(z), axis=-1, keepdims=True))
    logp = z - lse                                           # log-softmax
    logpt = jnp.sum(onehot * logp, axis=-1, keepdims=True)   # (N, 1)
    pt = jnp.exp(logpt)
    alpha_t = jnp.sum(onehot * alpha, axis=-1, keepdims=True)
    one_m_pt = jnp.maximum(1.0 - pt, 0.0)                    # clamp: pt can round to >= 1
    p2 = one_m_pt * one_m_pt                                 # integer pow, gamma = 5
    p4 = p2 * p2
    focal_w = p4 * one_m_pt
    per_ex = -alpha_t * focal_w * logpt                      # (N, 1)
    return jnp.mean(per_ex, keepdims=True)                   # (1, 1)


def fused_eval_kernel(xcols_ref, wc_ref, bc_ref, pool_ref, wfc_ref, bfc_ref,
                      feat_ref, logit_ref):
    feat, logits = _backbone_compute(xcols_ref, wc_ref, bc_ref,
                                     pool_ref, wfc_ref, bfc_ref)
    feat_ref[...] = feat
    logit_ref[...] = logits


def fused_train_kernel(xcols_ref, wc_ref, bc_ref, pool_ref, wfc_ref, bfc_ref,
                       onehot_ref, alpha_ref, feat_ref, logit_ref, loss_ref):
    feat, logits = _backbone_compute(xcols_ref, wc_ref, bc_ref,
                                     pool_ref, wfc_ref, bfc_ref)
    feat_ref[...] = feat
    logit_ref[...] = logits
    loss_ref[...] = _focal_loss(logits, onehot_ref[...], alpha_ref[...])


# ---------------------------------------------------------------------------
# pallas_call wrappers (single grid step, everything in one block)
# ---------------------------------------------------------------------------
_BACKBONE_IN_SPECS = [
    pl.BlockSpec((NHW, KPAD), lambda i: (0, 0)),            # im2col (bf16)
    pl.BlockSpec((KPAD, COUT), lambda i: (0, 0)),           # conv weight (bf16)
    pl.BlockSpec((1, COUT), lambda i: (0, 0)),              # conv bias (f32)
    pl.BlockSpec((N, NHW), lambda i: (0, 0)),               # pooling matrix (f32)
    pl.BlockSpec((COUT, NUM_CLASSES), lambda i: (0, 0)),    # fc weight (f32)
    pl.BlockSpec((1, NUM_CLASSES), lambda i: (0, 0)),       # fc bias (f32)
]

_BACKBONE_OUT_SPECS = [
    pl.BlockSpec((N, COUT), lambda i: (0, 0)),              # feature
    pl.BlockSpec((N, NUM_CLASSES), lambda i: (0, 0)),       # logits
]

_COMPILER_PARAMS = pltpu.CompilerParams(dimension_semantics=("arbitrary",))


def fused_forward_eval(xcols, wc, bc, pool, wfc, bfc):
    return pl.pallas_call(
        fused_eval_kernel,
        out_shape=(jax.ShapeDtypeStruct((N, COUT), jnp.float32),
                   jax.ShapeDtypeStruct((N, NUM_CLASSES), jnp.float32)),
        grid_spec=pltpu.PrefetchScalarGridSpec(
            num_scalar_prefetch=0,
            grid=(1,),
            in_specs=list(_BACKBONE_IN_SPECS),
            out_specs=list(_BACKBONE_OUT_SPECS),
        ),
        compiler_params=_COMPILER_PARAMS,
    )(xcols, wc, bc, pool, wfc, bfc)


def fused_forward_train(xcols, wc, bc, pool, wfc, bfc, onehot, alpha):
    return pl.pallas_call(
        fused_train_kernel,
        out_shape=(jax.ShapeDtypeStruct((N, COUT), jnp.float32),
                   jax.ShapeDtypeStruct((N, NUM_CLASSES), jnp.float32),
                   jax.ShapeDtypeStruct((1, 1), jnp.float32)),
        grid_spec=pltpu.PrefetchScalarGridSpec(
            num_scalar_prefetch=0,
            grid=(1,),
            in_specs=list(_BACKBONE_IN_SPECS) + [
                pl.BlockSpec((N, NUM_CLASSES), lambda i: (0, 0)),   # onehot target
                pl.BlockSpec((1, NUM_CLASSES), lambda i: (0, 0)),   # alpha
            ],
            out_specs=list(_BACKBONE_OUT_SPECS) + [
                pl.BlockSpec((1, 1), lambda i: (0, 0)),             # focal loss scalar
            ],
        ),
        compiler_params=_COMPILER_PARAMS,
    )(xcols, wc, bc, pool, wfc, bfc, onehot, alpha)


# ---------------------------------------------------------------------------
# Glue: parameter init, im2col fold, Network.forward equivalent
# ---------------------------------------------------------------------------
def init_params():
    k = jax.random.PRNGKey(0)
    k1, k2 = jax.random.split(k, 2)
    w_conv = (jax.random.normal(k1, (3, 3, CIN, COUT), jnp.float32)
              * (1.0 / jnp.sqrt(9.0 * CIN)))
    b_conv = jnp.zeros((1, COUT), jnp.float32)
    w_fc = (jax.random.normal(k2, (COUT, NUM_CLASSES), jnp.float32)
            * (1.0 / jnp.sqrt(float(COUT))))
    b_fc = jnp.zeros((1, NUM_CLASSES), jnp.float32)
    # cfg.FOCAL_LOSS_ALPHA stand-in: per-class alpha vector
    alpha = jnp.full((1, NUM_CLASSES), 0.25, jnp.float32)
    return dict(w_conv=w_conv, b_conv=b_conv, w_fc=w_fc, b_fc=b_fc, alpha=alpha)


def _im2col(x_nhwc):
    """(N,H,W,CIN) -> (N*HW, KPAD): 9 taps folded into one (kh,kw,cin) K dim, zero-padded."""
    xp = jnp.pad(x_nhwc, ((0, 0), (1, 1), (1, 1), (0, 0)))
    taps = [xp[:, kh:kh + H, kw:kw + W, :] for kh in range(3) for kw in range(3)]
    cols = jnp.concatenate(taps, axis=-1).reshape(NHW, K_RAW)
    return jnp.pad(cols, ((0, 0), (0, KPAD - K_RAW)))


def _conv_weight_2d(w_conv):
    """(3,3,CIN,COUT) -> (KPAD, COUT), same (kh,kw,cin) order as the im2col fold."""
    w2 = w_conv.reshape(K_RAW, COUT)
    return jnp.pad(w2, ((0, KPAD - K_RAW), (0, 0)))


@functools.partial(jax.jit, static_argnames=("training",))
def network_forward(params, images_nchw, target=None, training=False):
    """Mirrors Network.forward: training -> (losses, x); eval -> (feature, x)."""
    x_nhwc = jnp.transpose(images_nchw, (0, 2, 3, 1)).astype(jnp.float32)
    # bf16 MXU operands, f32 accumulation inside the kernel
    xcols = _im2col(x_nhwc).astype(jnp.bfloat16)
    wc = _conv_weight_2d(params["w_conv"]).astype(jnp.bfloat16)
    # block-diagonal (N, N*HW) averaging matrix: global-avg-pool as a matmul
    pool = jnp.kron(jnp.eye(N, dtype=jnp.float32),
                    jnp.full((1, HW), 1.0 / HW, jnp.float32))

    if training:
        onehot = jax.nn.one_hot(target, NUM_CLASSES, dtype=jnp.float32)
        feature, logits, loss = fused_forward_train(
            xcols, wc, params["b_conv"], pool,
            params["w_fc"], params["b_fc"], onehot, params["alpha"])
        losses = {"focal_loss": 2.0 * loss[0, 0]}   # "2 * self.focal_loss(x, target)"
        return losses, logits

    feature, logits = fused_forward_eval(
        xcols, wc, params["b_conv"], pool, params["w_fc"], params["b_fc"])
    return feature, logits


# ---------------------------------------------------------------------------
if __name__ == "__main__":
    params = init_params()

    key = jax.random.PRNGKey(0)
    k_img, k_tgt = jax.random.split(key)
    images = jax.random.normal(k_img, (N, CIN, H, W), jnp.float32)   # NCHW like PyTorch
    target = jax.random.randint(k_tgt, (N,), 0, NUM_CLASSES)

    # eval branch: (feature, x)
    feature, x = network_forward(params, images, training=False)
    feature, x = jax.block_until_ready((feature, x))

    # training branch: (losses, x)
    losses, x_tr = network_forward(params, images, target, training=True)
    losses, x_tr = jax.block_until_ready((losses, x_tr))

    assert feature.shape == (N, COUT)
    assert x.shape == (N, NUM_CLASSES)
    assert losses["focal_loss"].shape == ()
    assert bool(jnp.isfinite(losses["focal_loss"]))

    print("KERNEL_OK")
</pallas_src>

<mosaic_0001>
module attributes {stable_mosaic.version = 11 : i64} {
  func.func @fused_eval_kernel(%arg0: i32, %arg1: memref<512x128xbf16, #tpu.memory_space<vmem>>, %arg2: memref<128x32xbf16, #tpu.memory_space<vmem>>, %arg3: memref<1x32xf32, #tpu.memory_space<vmem>>, %arg4: memref<2x512xf32, #tpu.memory_space<vmem>>, %arg5: memref<32x5xf32, #tpu.memory_space<vmem>>, %arg6: memref<1x5xf32, #tpu.memory_space<vmem>>, %arg7: memref<2x32xf32, #tpu.memory_space<vmem>>, %arg8: memref<2x5xf32, #tpu.memory_space<vmem>>) attributes {dimension_semantics = [#tpu.dimension_semantics<arbitrary>], iteration_bounds = array<i64: 1>, scalar_prefetch = 0 : i64, scratch_operands = 0 : i64, tpu.core_type = #tpu.core_type<tc>, window_params = [{pipeline_mode = #tpu.pipeline_mode<synchronous>, transform_indices = @transform_0, window_bounds = array<i64: 512, 128>}, {pipeline_mode = #tpu.pipeline_mode<synchronous>, transform_indices = @transform_1, window_bounds = array<i64: 128, 32>}, {pipeline_mode = #tpu.pipeline_mode<synchronous>, transform_indices = @transform_2, window_bounds = array<i64: 1, 32>}, {pipeline_mode = #tpu.pipeline_mode<synchronous>, transform_indices = @transform_3, window_bounds = array<i64: 2, 512>}, {pipeline_mode = #tpu.pipeline_mode<synchronous>, transform_indices = @transform_4, window_bounds = array<i64: 32, 5>}, {pipeline_mode = #tpu.pipeline_mode<synchronous>, transform_indices = @transform_5, window_bounds = array<i64: 1, 5>}, {pipeline_mode = #tpu.pipeline_mode<synchronous>, transform_indices = @transform_6, window_bounds = array<i64: 2, 32>}, {pipeline_mode = #tpu.pipeline_mode<synchronous>, transform_indices = @transform_7, window_bounds = array<i64: 2, 5>}]} {
    %c0 = arith.constant 0 : index
    %c0_0 = arith.constant 0 : index
    %0 = vector.load %arg1[%c0, %c0_0] : memref<512x128xbf16, #tpu.memory_space<vmem>>, vector<512x128xbf16>
    %c0_1 = arith.constant 0 : index
    %c0_2 = arith.constant 0 : index
    %1 = vector.load %arg2[%c0_1, %c0_2] : memref<128x32xbf16, #tpu.memory_space<vmem>>, vector<128x32xbf16>
    %cst = arith.constant dense<0.000000e+00> : vector<512x32xf32>
    %2 = tpu.matmul %0, %1, %cst {dimension_numbers = #tpu.dot_dimension_numbers<[1], [0], [0], [1], [0, 0, 1, 1], [], []>} : vector<512x128xbf16>, vector<128x32xbf16>, vector<512x32xf32> -> vector<512x32xf32>
    %c0_3 = arith.constant 0 : index
    %c0_4 = arith.constant 0 : index
    %3 = vector.load %arg3[%c0_3, %c0_4] : memref<1x32xf32, #tpu.memory_space<vmem>>, vector<1x32xf32>
    %4 = vector.broadcast %3 : vector<1x32xf32> to vector<512x32xf32>
    %5 = arith.addf %2, %4 : vector<512x32xf32>
    %cst_5 = arith.constant 0.000000e+00 : f32
    %6 = vector.broadcast %cst_5 : f32 to vector<512x32xf32>
    %7 = arith.maximumf %5, %6 : vector<512x32xf32>
    %c0_6 = arith.constant 0 : index
    %c0_7 = arith.constant 0 : index
    %8 = vector.load %arg4[%c0_6, %c0_7] : memref<2x512xf32, #tpu.memory_space<vmem>>, vector<2x512xf32>
    %cst_8 = arith.constant dense<0.000000e+00> : vector<2x32xf32>
    %9 = tpu.matmul %8, %7, %cst_8 {dimension_numbers = #tpu.dot_dimension_numbers<[1], [0], [0], [1], [0, 0, 1, 1], [], []>} : vector<2x512xf32>, vector<512x32xf32>, vector<2x32xf32> -> vector<2x32xf32>
    %c0_9 = arith.constant 0 : index
    %c0_10 = arith.constant 0 : index
    %10 = vector.load %arg5[%c0_9, %c0_10] : memref<32x5xf32, #tpu.memory_space<vmem>>, vector<32x5xf32>
    %cst_11 = arith.constant dense<0.000000e+00> : vector<2x5xf32>
    %11 = tpu.matmul %9, %10, %cst_11 {dimension_numbers = #tpu.dot_dimension_numbers<[1], [0], [0], [1], [0, 0, 1, 1], [], []>} : vector<2x32xf32>, vector<32x5xf32>, vector<2x5xf32> -> vector<2x5xf32>
    %c0_12 = arith.constant 0 : index
    %c0_13 = arith.constant 0 : index
    %12 = vector.load %arg6[%c0_12, %c0_13] : memref<1x5xf32, #tpu.memory_space<vmem>>, vector<1x5xf32>
    %13 = vector.broadcast %12 : vector<1x5xf32> to vector<2x5xf32>
    %14 = arith.addf %11, %13 : vector<2x5xf32>
    %c0_14 = arith.constant 0 : index
    %c0_15 = arith.constant 0 : index
    %15 = vector.load %arg7[%c0_14, %c0_15] : memref<2x32xf32, #tpu.memory_space<vmem>>, vector<2x32xf32>
    tpu.vector_store %arg7[%c0_14, %c0_15], %9 {strides = array<i32>} : memref<2x32xf32, #tpu.memory_space<vmem>>, vector<2x32xf32>,
    %c0_16 = arith.constant 0 : index
    %c0_17 = arith.constant 0 : index
    %16 = vector.load %arg8[%c0_16, %c0_17] : memref<2x5xf32, #tpu.memory_space<vmem>>, vector<2x5xf32>
    tpu.vector_store %arg8[%c0_16, %c0_17], %14 {strides = array<i32>} : memref<2x5xf32, #tpu.memory_space<vmem>>, vector<2x5xf32>,
    return
  }
  func.func @transform_0(%arg0: i32) -> (i32, i32) {
    %c0_i32 = arith.constant 0 : i32
    %c0_i32_0 = arith.constant 0 : i32
    %c0_i32_1 = arith.constant 0 : i32
    return %c0_i32, %c0_i32_0 : i32, i32
  }
  func.func @transform_1(%arg0: i32) -> (i32, i32) {
    %c0_i32 = arith.constant 0 : i32
    %c0_i32_0 = arith.constant 0 : i32
    %c0_i32_1 = arith.constant 0 : i32
    return %c0_i32, %c0_i32_0 : i32, i32
  }
  func.func @transform_2(%arg0: i32) -> (i32, i32) {
    %c0_i32 = arith.constant 0 : i32
    %c0_i32_0 = arith.constant 0 : i32
    %c0_i32_1 = arith.constant 0 : i32
    return %c0_i32, %c0_i32_0 : i32, i32
  }
  func.func @transform_3(%arg0: i32) -> (i32, i32) {
    %c0_i32 = arith.constant 0 : i32
    %c0_i32_0 = arith.constant 0 : i32
    %c0_i32_1 = arith.constant 0 : i32
    return %c0_i32, %c0_i32_0 : i32, i32
  }
  func.func @transform_4(%arg0: i32) -> (i32, i32) {
    %c0_i32 = arith.constant 0 : i32
    %c0_i32_0 = arith.constant 0 : i32
    %c0_i32_1 = arith.constant 0 : i32
    return %c0_i32, %c0_i32_0 : i32, i32
  }
  func.func @transform_5(%arg0: i32) -> (i32, i32) {
    %c0_i32 = arith.constant 0 : i32
    %c0_i32_0 = arith.constant 0 : i32
    %c0_i32_1 = arith.constant 0 : i32
    return %c0_i32, %c0_i32_0 : i32, i32
  }
  func.func @transform_6(%arg0: i32) -> (i32, i32) {
    %c0_i32 = arith.constant 0 : i32
    %c0_i32_0 = arith.constant 0 : i32
    %c0_i32_1 = arith.constant 0 : i32
    return %c0_i32, %c0_i32_0 : i32, i32
  }
  func.func @transform_7(%arg0: i32) -> (i32, i32) {
    %c0_i32 = arith.constant 0 : i32
    %c0_i32_0 = arith.constant 0 : i32
    %c0_i32_1 = arith.constant 0 : i32
    return %c0_i32, %c0_i32_0 : i32, i32
  }
}

</mosaic_0001>

<bundles_post_ra>
// kernel: network_forward.1
= control target key start
LH: loop header
LB: loop body
LE: loop exit
PB: predicated region body
PF: predicated region fallthrough
CT: control target
= control target key end

     0   :  { %13 = vsyncpa [#allocation3], 0  ;;  %s1759_s0 = inlined_call_operand.vmem [shape: bf16[512,128], index: 0, kind: input, shape index: {}]   ;;  %s1760_s1 = inlined_call_operand.vmem [shape: bf16[128,32], index: 1, kind: input, shape index: {}]   ;;  %s1761_s2 = inlined_call_operand.vmem [shape: f32[1,32], index: 2, kind: input, shape index: {}]   ;;  %s1762_s3 = inlined_call_operand.vmem [shape: f32[2,512], index: 3, kind: input, shape index: {}]   ;;  %s1763_s4 = inlined_call_operand.vmem [shape: f32[32,5], index: 4, kind: input, shape index: {}]   ;;  %s1764_s5 = inlined_call_operand.vmem [shape: f32[1,5], index: 5, kind: input, shape index: {}]   ;;  %s1765_s6 = inlined_call_operand.hbm [shape: f32[2,32], index: 6, kind: output, shape index: {0}]   ;;  %s1766_s7 = inlined_call_operand.hbm [shape: f32[2,5], index: 7, kind: output, shape index: {1}]  }
   0x1   :  { %v1329_v0 = vld [vmem:[%s1760_s1] sm:$0xff]   ;;  %v1330_v1 = vld [vmem:[%s1760_s1 + $0x8] sm:$0xff]   ;;  %v1331_v2 = vld [vmem:[%s1760_s1 + $0x10] sm:$0xff]  }
   0x2   :  { %1146 = vmatprep.subr.bf16.mxu0 %v1329_v0  ;;  %1307 = vmatprep.subr.bf16.mxu1 %v1329_v0  ;;  %v1332_v3 = vld [vmem:[%s1760_s1 + $0x18] sm:$0xff]   ;;  %v1337_v4 = vld [vmem:[%s1759_s0] sm:$0xff]   ;;  %v1334_v6 = vld [vmem:[%s1760_s1 + $0x28] sm:$0xff]  }
   0x3   :  { %1147 = vmatpush3.bf16.msra.mxu0 %v1329_v0  ;;  %1315 = vmatpush3.bf16.msra.mxu1 %v1329_v0  ;;  %v1333_v5 = vld [vmem:[%s1760_s1 + $0x20] sm:$0xff]   ;;  %v1335_v7 = vld [vmem:[%s1760_s1 + $0x30] sm:$0xff]   ;;  %v1336_v9 = vld [vmem:[%s1760_s1 + $0x38] sm:$0xff]  }
   0x4   :  { %1148 = vmatprep.subr.bf16.mxu0 %v1330_v1  ;;  %1308 = vmatprep.subr.bf16.mxu1 %v1330_v1  ;;  %v1352_v8 = vld [vmem:[%s1759_s0 + $0xb0] sm:$0xff]   ;;  %v1338_v10 = vld [vmem:[%s1759_s0 + $0x8] sm:$0xff]   ;;  %v1354_v12 = vld [vmem:[%s1759_s0 + $0xb8] sm:$0xff]  }
   0x5   :  { %1162 = vmatprep.mubr.bf16.mxu0 %v1337_v4  ;;  %1206 = vmatprep.mubr.bf16.mxu1 %v1352_v8  ;;  %v1339_v11 = vld [vmem:[%s1759_s0 + $0x10] sm:$0xff]   ;;  %v1355_v13 = vld [vmem:[%s1759_s0 + $0xc0] sm:$0xff]   ;;  %v1340_v14 = vld [vmem:[%s1759_s0 + $0x18] sm:$0xff]  }
   0x6   :  { %v1341_v15 = vld [vmem:[%s1759_s0 + $0x20] sm:$0xff]   ;;  %v1357_v16 = vld [vmem:[%s1759_s0 + $0xc8] sm:$0xff]   ;;  %v1359_v17 = vld [vmem:[%s1759_s0 + $0xd0] sm:$0xff]  }
   0x7   :  { %1149 = vmatpush3.bf16.msra.mxu0 %v1330_v1  ;;  %1316 = vmatpush3.bf16.msra.mxu1 %v1330_v1 }
   0x8   :  { %1150 = vmatprep.subr.bf16.mxu0 %v1331_v2  ;;  %1309 = vmatprep.subr.bf16.mxu1 %v1331_v2 }
   0xb   :  { %1151 = vmatpush3.bf16.msra.mxu0 %v1331_v2  ;;  %1317 = vmatpush3.bf16.msra.mxu1 %v1331_v2 }
   0xc   :  { %1152 = vmatprep.subr.bf16.mxu0 %v1332_v3  ;;  %1310 = vmatprep.subr.bf16.mxu1 %v1332_v3 }
   0xf   :  { %1153 = vmatpush3.bf16.msra.mxu0 %v1332_v3  ;;  %1318 = vmatpush3.bf16.msra.mxu1 %v1332_v3 }
  0x10   :  { %1154 = vmatprep.subr.bf16.mxu0 %v1333_v5  ;;  %1311 = vmatprep.subr.bf16.mxu1 %v1333_v5 }
  0x13   :  { %1155 = vmatpush3.bf16.msra.mxu0 %v1333_v5  ;;  %1319 = vmatpush3.bf16.msra.mxu1 %v1333_v5 }
  0x14   :  { %1156 = vmatprep.subr.bf16.mxu0 %v1334_v6  ;;  %1312 = vmatprep.subr.bf16.mxu1 %v1334_v6 }
  0x17   :  { %1157 = vmatpush3.bf16.msra.mxu0 %v1334_v6  ;;  %1320 = vmatpush3.bf16.msra.mxu1 %v1334_v6 }
  0x18   :  { %1158 = vmatprep.subr.bf16.mxu0 %v1335_v7  ;;  %1313 = vmatprep.subr.bf16.mxu1 %v1335_v7 }
  0x1b   :  { %1159 = vmatpush3.bf16.msra.mxu0 %v1335_v7  ;;  %1321 = vmatpush3.bf16.msra.mxu1 %v1335_v7 }
  0x1c   :  { %1160 = vmatprep.subr.bf16.mxu0 %v1336_v9  ;;  %1314 = vmatprep.subr.bf16.mxu1 %v1336_v9 }
  0x1f   :  { %1161 = vmatpush3.bf16.msra.mxu0 %v1336_v9  ;;  %1322 = vmatpush3.bf16.msra.mxu1 %v1336_v9 }
  0x22   :  { %1163 = vmatmul.mubr.bf16.vlgmr.msra.gmra.mrb[0].mxu0 %v1338_v10  ;;  %1207 = vmatmul.mubr.bf16.vlgmr.msra.gmra.mrb[0].mxu1 %v1354_v12 }
  0x23   :  { %1166 = vmatprep.mubr.bf16.mxu0 %v1339_v11  ;;  %1210 = vmatprep.mubr.bf16.mxu1 %v1355_v13 }
  0x24   :  { %14 = vsyncpa [#allocation5], 0  ;;  %v1342_v18 = vld [vmem:[%s1759_s0 + $0x28] sm:$0xff]   ;;  %v1361_v19 = vld [vmem:[%s1759_s0 + $0xd8] sm:$0xff]   ;;  %v1418_v40 = vmov 1983009808   ;;  %v714_v42 = vlaneseq }
  0x25   :  { %v1343_v20 = vld [vmem:[%s1759_s0 + $0x30] sm:$0xff]   ;;  %v1363_v21 = vld [vmem:[%s1759_s0 + $0xe0] sm:$0xff]   ;;  %v1344_v22 = vld [vmem:[%s1759_s0 + $0x38] sm:$0xff]   ;;  %v712_v41 = vunpack.c.l.s4 %v1418_v40  ;;  %vm1420_vm0 = vmmov 0   ;;  %vm882_vm1 = vcmask 261120   ;;  %vm956_vm2 = vcmask 254976  }
  0x26   :  { %v1365_v23 = vld [vmem:[%s1759_s0 + $0xe8] sm:$0xff]   ;;  %v1345_v24 = vld [vmem:[%s1759_s0 + $0x40] sm:$0xff]   ;;  %v1367_v25 = vld [vmem:[%s1759_s0 + $0xf0] sm:$0xff]   ;;  %v715_v44 = vshrl.u32 %v714_v42, 7  ;;  %s1422_s18 = smov [#allocation2]  }
  0x27   :  { %v1346_v26 = vld [vmem:[%s1759_s0 + $0x48] sm:$0xff]   ;;  %v1368_v27 = vld [vmem:[%s1759_s0 + $0xf8] sm:$0xff]   ;;  %v1347_v28 = vld [vmem:[%s1759_s0 + $0x50] sm:$0xff]   ;;  %v713_v43 = vunpack.c.0.s8 %v712_v41  ;;  %s966_s19 = sshll.u32 %s1422_s18, 4  ;;  %s967_s19 = int_to_ptr.vmem [resolvable:$true] %s966_s19 }
  0x28   :  { %v1348_v29 = vld [vmem:[%s1759_s0 + $0x58] sm:$0xff]   ;;  %v1349_v30 = vld [vmem:[%s1759_s0 + $0x60] sm:$0xff]   ;;  %v1350_v31 = vld [vmem:[%s1759_s0 + $0x68] sm:$0xff]   ;;  %p1375_p1 = scmp.lt.s32.totalorder %s967_s19, %s967_s19 }
  0x29   :  { %v1351_v32 = vld [vmem:[%s1759_s0 + $0x70] sm:$0xff]   ;;  %v1353_v33 = vld [vmem:[%s1759_s0 + $0x78] sm:$0xff]   ;;  %v1356_v34 = vld [vmem:[%s1759_s0 + $0x80] sm:$0xff]   ;;  %v716_v45 = vsub.s32 %v713_v43, %v715_v44 }
  0x2a   :  { %1167 = vmatmul.mubr.bf16.gmra.mrb[4].mxu0 %v1340_v14  ;;  %1211 = vmatmul.mubr.bf16.gmra.mrb[4].mxu1 %v1357_v16  ;;  %v1358_v35 = vld [vmem:[%s1759_s0 + $0x88] sm:$0xff]   ;;  %v1360_v36 = vld [vmem:[%s1759_s0 + $0x90] sm:$0xff]   ;;  %v1362_v37 = vld [vmem:[%s1759_s0 + $0x98] sm:$0xff]  }
  0x2b   :  { %1170 = vmatprep.mubr.bf16.mxu0 %v1341_v15  ;;  %1214 = vmatprep.mubr.bf16.mxu1 %v1359_v17  ;;  %v1364_v38 = vld [vmem:[%s1759_s0 + $0xa0] sm:$0xff]   ;;  %v1366_v39 = vld [vmem:[%s1759_s0 + $0xa8] sm:$0xff]  }
  0x2c   :  { %v708_v46 = vld [vmem:[%s1762_s3] sm:$0xff] }
  0x2d   :  { %v1587_v47 = vrot.slane %v708_v46, %v716_v45  ;;  %v710_v49 = vcombine.high %v708_v46, %v708_v46  ;;  %v1596_v51 = vld [vmem:[%s1761_s2] ss:$0 sm:$0xff] }
  0x2f   :  { %v725_v48 = vcombine.high %v1587_v47, %v1587_v47  ;;  %v1591_v50 = vrot.slane %v710_v49, %v716_v45 }
  0x32   :  { %1171 = vmatmul.mubr.bf16.gmra.mrb[8].mxu0 %v1342_v18  ;;  %1215 = vmatmul.mubr.bf16.gmra.mrb[8].mxu1 %v1361_v19 }
  0x33   :  { %1174 = vmatprep.mubr.bf16.mxu0 %v1343_v20  ;;  %1218 = vmatprep.mubr.bf16.mxu1 %v1363_v21 }
  0x3a   :  { %1175 = vmatmul.mubr.bf16.gmra.mrb[12].mxu0 %v1344_v22  ;;  %1219 = vmatmul.mubr.bf16.gmra.mrb[12].mxu1 %v1365_v23 }
  0x3b   :  { %1178 = vmatprep.mubr.bf16.mxu0 %v1345_v24  ;;  %1222 = vmatprep.mubr.bf16.mxu1 %v1367_v25 }
  0x42   :  { %1179 = vmatmul.mubr.bf16.gmra.mrb[16].mxu0 %v1346_v26  ;;  %1223 = vmatmul.mubr.bf16.gmra.mrb[16].mxu1 %v1368_v27 }
  0x43   :  { %1182 = vmatprep.mubr.bf16.mxu0 %v1347_v28  ;;  %795 = vmatprep.mubr.f32.mxu1 %v725_v48 }
  0x4a   :  { %1183 = vmatmul.mubr.bf16.gmra.mrb[20].mxu0 %v1348_v29 }
  0x4b   :  { %1186 = vmatprep.mubr.bf16.mxu0 %v1349_v30 }
  0x52   :  { %1187 = vmatmul.mubr.bf16.gmra.mrb[24].mxu0 %v1350_v31 }
  0x53   :  { %1190 = vmatprep.mubr.bf16.mxu0 %v1351_v32 }
  0x5a   :  { %1191 = vmatmul.mubr.bf16.gmra.mrb[28].mxu0 %v1353_v33 }
  0x5b   :  { %1194 = vmatprep.mubr.bf16.mxu0 %v1356_v34 }
  0x62   :  { %1195 = vmatmul.mubr.bf16.gmra.mrb[32].mxu0 %v1358_v35 }
  0x63   :  { %1198 = vmatprep.mubr.bf16.mxu0 %v1360_v36 }
  0x6a   :  { %1199 = vmatmul.mubr.bf16.gmra.mrb[36].mxu0 %v1362_v37 }
  0x6b   :  { %1202 = vmatprep.mubr.bf16.mxu0 %v1364_v38 }
  0x72   :  { %1203 = vmatmul.mubr.bf16.gmra.mrb[40].mxu0 %v1366_v39 }
  0xf5   :  { %v1164_v52 = vpop.f32.mrb[0].mxu0  ;;  %v1208_v53 = vpop.f32.mrb[0].mxu1 }
  0xf6   :  { %v398_v54 = vadd.f32 %v1164_v52, %v1596_v51  ;;  %v389_v55 = vpop.f32.mrb[1].mxu0  ;;  %v574_v56 = vadd.f32 %v1208_v53, %v1596_v51  ;;  %v565_v57 = vpop.f32.mrb[1].mxu1 }
  0xf7   :  { %v390_v58 = vadd.f32 %v1596_v51, %v389_v55  ;;  %v1165_v59 = vpop.f32.mrb[2].mxu0  ;;  %v566_v60 = vadd.f32 %v1596_v51, %v565_v57  ;;  %v1209_v61 = vpop.f32.mrb[2].mxu1 }
  0xf8   :  { %v401_v62 = vadd.f32 %v1165_v59, %v1596_v51  ;;  %v392_v63 = vpop.f32.mrb[3].mxu0  ;;  %v690_v0 = vmax.f32 %v574_v56, 0.0  ;;  %v577_v1 = vadd.f32 %v1209_v61, %v1596_v51  ;;  %v568_v2 = vpop.f32.mrb[3].mxu1  ;;  %v646_v6 = vmax.f32 %v398_v54, 0.0 }
  0xf9   :  { %v393_v3 = vadd.f32 %v1596_v51, %v392_v63  ;;  %v688_v4 = vmax.f32 %v566_v60, 0.0  ;;  %v569_v5 = vadd.f32 %v1596_v51, %v568_v2  ;;  %v644_v9 = vmax.f32 %v390_v58, 0.0 }
  0xfa   :  { %v647_v7 = vmax.f32 %v401_v62, 0.0  ;;  %v691_v8 = vmax.f32 %v577_v1, 0.0 }
  0xfb   :  { %v645_v10 = vmax.f32 %v393_v3, 0.0  ;;  %v689_v11 = vmax.f32 %v569_v5, 0.0 }
  0xfc   :  { %v1606_v12 = vpack.c.bf16 %v647_v7, %v646_v6  ;;  %v1608_v13 = vpack.c.bf16 %v691_v8, %v690_v0 }
  0xfd   :  { %v1610_v14 = vpack.c.bf16 %v645_v10, %v644_v9  ;;  %v1168_v15 = vpop.f32.mrb[4].mxu0  ;;  %v1612_v16 = vpack.c.bf16 %v689_v11, %v688_v4  ;;  %v1212_v17 = vpop.f32.mrb[4].mxu1 }
  0xfe   :  { %v414_v18 = vadd.f32 %v1168_v15, %v1596_v51  ;;  %v405_v19 = vpop.f32.mrb[5].mxu0  ;;  %v590_v20 = vadd.f32 %v1212_v17, %v1596_v51  ;;  %v581_v21 = vpop.f32.mrb[5].mxu1 }
  0xff   :  { %v406_v22 = vadd.f32 %v1596_v51, %v405_v19  ;;  %v1169_v23 = vpop.f32.mrb[6].mxu0  ;;  %v582_v24 = vadd.f32 %v1596_v51, %v581_v21  ;;  %v1213_v25 = vpop.f32.mrb[6].mxu1 }
 0x100   :  { %v417_v26 = vadd.f32 %v1169_v23, %v1596_v51  ;;  %v408_v27 = vpop.f32.mrb[7].mxu0  ;;  %v694_v28 = vmax.f32 %v590_v20, 0.0  ;;  %v593_v29 = vadd.f32 %v1213_v25, %v1596_v51  ;;  %v584_v30 = vpop.f32.mrb[7].mxu1  ;;  %v650_v34 = vmax.f32 %v414_v18, 0.0 }
 0x101   :  { %v409_v31 = vadd.f32 %v1596_v51, %v408_v27  ;;  %v692_v32 = vmax.f32 %v582_v24, 0.0  ;;  %v585_v33 = vadd.f32 %v1596_v51, %v584_v30  ;;  %v648_v37 = vmax.f32 %v406_v22, 0.0 }
 0x102   :  { %v651_v35 = vmax.f32 %v417_v26, 0.0  ;;  %v695_v36 = vmax.f32 %v593_v29, 0.0 }
 0x103   :  { %v649_v38 = vmax.f32 %v409_v31, 0.0  ;;  %v693_v39 = vmax.f32 %v585_v33, 0.0 }
 0x104   :  { %v1622_v40 = vpack.c.bf16 %v651_v35, %v650_v34  ;;  %v1624_v41 = vpack.c.bf16 %v695_v36, %v694_v28 }
 0x105   :  { %v1626_v42 = vpack.c.bf16 %v649_v38, %v648_v37  ;;  %v1172_v43 = vpop.f32.mrb[8].mxu0  ;;  %v1628_v44 = vpack.c.bf16 %v693_v39, %v692_v32  ;;  %v1216_v45 = vpop.f32.mrb[8].mxu1 }
 0x106   :  { %v430_v46 = vadd.f32 %v1172_v43, %v1596_v51  ;;  %v421_v48 = vpop.f32.mrb[9].mxu0  ;;  %v606_v49 = vadd.f32 %v1216_v45, %v1596_v51  ;;  %v597_v52 = vpop.f32.mrb[9].mxu1 }
 0x107   :  { %v422_v53 = vadd.f32 %v1596_v51, %v421_v48  ;;  %v1173_v54 = vpop.f32.mrb[10].mxu0  ;;  %v598_v55 = vadd.f32 %v1596_v51, %v597_v52  ;;  %v1217_v56 = vpop.f32.mrb[10].mxu1 }
 0x108   :  { %v433_v57 = vadd.f32 %v1173_v54, %v1596_v51  ;;  %v424_v58 = vpop.f32.mrb[11].mxu0  ;;  %v698_v59 = vmax.f32 %v606_v49, 0.0  ;;  %v609_v60 = vadd.f32 %v1217_v56, %v1596_v51  ;;  %v600_v61 = vpop.f32.mrb[11].mxu1  ;;  %v654_v1 = vmax.f32 %v430_v46, 0.0 }
 0x109   :  { %v425_v62 = vadd.f32 %v1596_v51, %v424_v58  ;;  %v696_v63 = vmax.f32 %v598_v55, 0.0  ;;  %v601_v0 = vadd.f32 %v1596_v51, %v600_v61  ;;  %v652_v4 = vmax.f32 %v422_v53, 0.0 }
 0x10a   :  { %v655_v2 = vmax.f32 %v433_v57, 0.0  ;;  %v699_v3 = vmax.f32 %v609_v60, 0.0 }
 0x10b   :  { %v653_v5 = vmax.f32 %v425_v62, 0.0  ;;  %v697_v6 = vmax.f32 %v601_v0, 0.0 }
 0x10c   :  { %v1638_v7 = vpack.c.bf16 %v655_v2, %v654_v1  ;;  %v1640_v8 = vpack.c.bf16 %v699_v3, %v698_v59 }
 0x10d   :  { %v1642_v9 = vpack.c.bf16 %v653_v5, %v652_v4  ;;  %v1176_v10 = vpop.f32.mrb[12].mxu0  ;;  %v1644_v11 = vpack.c.bf16 %v697_v6, %v696_v63  ;;  %v1220_v15 = vpop.f32.mrb[12].mxu1 }
 0x10e   :  { %v446_v17 = vadd.f32 %v1176_v10, %v1596_v51  ;;  %v437_v18 = vpop.f32.mrb[13].mxu0  ;;  %v622_v19 = vadd.f32 %v1220_v15, %v1596_v51  ;;  %v613_v20 = vpop.f32.mrb[13].mxu1 }
 0x10f   :  { %v438_v21 = vadd.f32 %v1596_v51, %v437_v18  ;;  %v1177_v22 = vpop.f32.mrb[14].mxu0  ;;  %v614_v23 = vadd.f32 %v1596_v51, %v613_v20  ;;  %v1221_v24 = vpop.f32.mrb[14].mxu1 }
 0x110   :  { %v449_v25 = vadd.f32 %v1177_v22, %v1596_v51  ;;  %v440_v26 = vpop.f32.mrb[15].mxu0  ;;  %v702_v27 = vmax.f32 %v622_v19, 0.0  ;;  %v625_v28 = vadd.f32 %v1221_v24, %v1596_v51  ;;  %v616_v29 = vpop.f32.mrb[15].mxu1  ;;  %v658_v33 = vmax.f32 %v446_v17, 0.0 }
 0x111   :  { %v441_v30 = vadd.f32 %v1596_v51, %v440_v26  ;;  %v700_v31 = vmax.f32 %v614_v23, 0.0  ;;  %v617_v32 = vadd.f32 %v1596_v51, %v616_v29  ;;  %v656_v36 = vmax.f32 %v438_v21, 0.0 }
 0x112   :  { %v659_v34 = vmax.f32 %v449_v25, 0.0  ;;  %v703_v35 = vmax.f32 %v625_v28, 0.0 }
 0x113   :  { %v657_v37 = vmax.f32 %v441_v30, 0.0  ;;  %v701_v38 = vmax.f32 %v617_v32, 0.0 }
 0x114   :  { %v1654_v39 = vpack.c.bf16 %v659_v34, %v658_v33  ;;  %v1656_v43 = vpack.c.bf16 %v703_v35, %v702_v27 }
 0x115   :  { %v1658_v45 = vpack.c.bf16 %v657_v37, %v656_v36  ;;  %v1180_v46 = vpop.f32.mrb[16].mxu0  ;;  %v1660_v48 = vpack.c.bf16 %v701_v38, %v700_v31  ;;  %v1224_v49 = vpop.f32.mrb[16].mxu1 }
 0x116   :  { %v462_v52 = vadd.f32 %v1180_v46, %v1596_v51  ;;  %v453_v53 = vpop.f32.mrb[17].mxu0  ;;  %v638_v54 = vadd.f32 %v1224_v49, %v1596_v51  ;;  %v629_v55 = vpop.f32.mrb[17].mxu1 }
 0x117   :  { %v454_v56 = vadd.f32 %v1596_v51, %v453_v53  ;;  %v1181_v57 = vpop.f32.mrb[18].mxu0  ;;  %v630_v58 = vadd.f32 %v1596_v51, %v629_v55  ;;  %v1225_v59 = vpop.f32.mrb[18].mxu1 }
 0x118   :  { %v465_v60 = vadd.f32 %v1181_v57, %v1596_v51  ;;  %v456_v61 = vpop.f32.mrb[19].mxu0  ;;  %v706_v62 = vmax.f32 %v638_v54, 0.0  ;;  %v641_v63 = vadd.f32 %v1225_v59, %v1596_v51  ;;  %v632_v0 = vpop.f32.mrb[19].mxu1  ;;  %v662_v4 = vmax.f32 %v462_v52, 0.0 }
 0x119   :  { %v457_v1 = vadd.f32 %v1596_v51, %v456_v61  ;;  %v704_v2 = vmax.f32 %v630_v58, 0.0  ;;  %v633_v3 = vadd.f32 %v1596_v51, %v632_v0  ;;  %v660_v10 = vmax.f32 %v454_v56, 0.0 }
 0x11a   :  { %v663_v5 = vmax.f32 %v465_v60, 0.0  ;;  %v707_v6 = vmax.f32 %v641_v63, 0.0 }
 0x11b   :  { %v661_v15 = vmax.f32 %v457_v1, 0.0  ;;  %v705_v17 = vmax.f32 %v633_v3, 0.0 }
 0x11c   :  { %v1241_v18 = vpack.c.bf16 %v663_v5, %v662_v4  ;;  %v1670_v19 = vpack.c.bf16 %v707_v6, %v706_v62 }
 0x11d   :  { %v1237_v20 = vpack.c.bf16 %v661_v15, %v660_v10  ;;  %v1184_v21 = vpop.f32.mrb[20].mxu0  ;;  %v1672_v22 = vpack.c.bf16 %v705_v17, %v704_v2 }
 0x11e   :  { %v478_v23 = vadd.f32 %v1184_v21, %v1596_v51  ;;  %v469_v24 = vpop.f32.mrb[21].mxu0 }
 0x11f   :  { %v470_v25 = vadd.f32 %v1596_v51, %v469_v24  ;;  %v1185_v26 = vpop.f32.mrb[22].mxu0  ;;  %1238 = vmatprep.subr.bf16.mxu1 %v1237_v20 }
 0x120   :  { %v481_v27 = vadd.f32 %v1185_v26, %v1596_v51  ;;  %v472_v28 = vpop.f32.mrb[23].mxu0  ;;  %1240 = vmatpush3.bf16.msra.mxu1 %v1610_v14  ;;  %v666_v30 = vmax.f32 %v478_v23, 0.0 }
 0x121   :  { %v473_v29 = vadd.f32 %v1596_v51, %v472_v28  ;;  %1242 = vmatprep.subr.bf16.mxu1 %v1241_v18  ;;  %v664_v32 = vmax.f32 %v470_v25, 0.0  ;;  %v726_v28 = vcombine.high %v1591_v50, %v1591_v50 }
 0x122   :  { %v667_v31 = vmax.f32 %v481_v27, 0.0 }
 0x123   :  { %v665_v33 = vmax.f32 %v473_v29, 0.0 }
 0x124   :  { %v1249_v34 = vpack.c.bf16 %v667_v31, %v666_v30  ;;  %1244 = vmatpush3.bf16.msra.mxu1 %v1606_v12 }
 0x125   :  { %v1245_v35 = vpack.c.bf16 %v665_v33, %v664_v32  ;;  %v1188_v36 = vpop.f32.mrb[24].mxu0 }
 0x126   :  { %v494_v37 = vadd.f32 %v1188_v36, %v1596_v51  ;;  %v485_v38 = vpop.f32.mrb[25].mxu0 }
 0x127   :  { %v486_v46 = vadd.f32 %v1596_v51, %v485_v38  ;;  %v1189_v49 = vpop.f32.mrb[26].mxu0  ;;  %1246 = vmatprep.subr.bf16.mxu1 %v1245_v35 }
 0x128   :  { %v497_v14 = vadd.f32 %v1189_v49, %v1596_v51  ;;  %v488_v52 = vpop.f32.mrb[27].mxu0  ;;  %1248 = vmatpush3.bf16.msra.mxu1 %v1626_v42  ;;  %v670_v54 = vmax.f32 %v494_v37, 0.0 }
 0x129   :  { %v489_v53 = vadd.f32 %v1596_v51, %v488_v52  ;;  %1250 = vmatprep.subr.bf16.mxu1 %v1249_v34  ;;  %v668_v12 = vmax.f32 %v486_v46, 0.0 }
 0x12a   :  { %v671_v55 = vmax.f32 %v497_v14, 0.0 }
 0x12b   :  { %v669_v56 = vmax.f32 %v489_v53, 0.0 }
 0x12c   :  { %v1257_v57 = vpack.c.bf16 %v671_v55, %v670_v54  ;;  %1252 = vmatpush3.bf16.msra.mxu1 %v1622_v40 }
 0x12d   :  { %v1253_v58 = vpack.c.bf16 %v669_v56, %v668_v12  ;;  %v1192_v59 = vpop.f32.mrb[28].mxu0 }
 0x12e   :  { %v510_v60 = vadd.f32 %v1192_v59, %v1596_v51  ;;  %v501_v61 = vpop.f32.mrb[29].mxu0 }
 0x12f   :  { %v502_v62 = vadd.f32 %v1596_v51, %v501_v61  ;;  %v1193_v63 = vpop.f32.mrb[30].mxu0  ;;  %1254 = vmatprep.subr.bf16.mxu1 %v1253_v58 }
 0x130   :  { %v513_v42 = vadd.f32 %v1193_v63, %v1596_v51  ;;  %v504_v0 = vpop.f32.mrb[31].mxu0  ;;  %1256 = vmatpush3.bf16.msra.mxu1 %v1642_v9  ;;  %v674_v2 = vmax.f32 %v510_v60, 0.0 }
 0x131   :  { %v505_v1 = vadd.f32 %v1596_v51, %v504_v0  ;;  %1258 = vmatprep.subr.bf16.mxu1 %v1257_v57  ;;  %v672_v40 = vmax.f32 %v502_v62, 0.0 }
 0x132   :  { %v675_v3 = vmax.f32 %v513_v42, 0.0 }
 0x133   :  { %v673_v4 = vmax.f32 %v505_v1, 0.0 }
 0x134   :  { %v1265_v5 = vpack.c.bf16 %v675_v3, %v674_v2  ;;  %1260 = vmatpush3.bf16.msra.mxu1 %v1638_v7 }
 0x135   :  { %v1261_v6 = vpack.c.bf16 %v673_v4, %v672_v40  ;;  %v1196_v10 = vpop.f32.mrb[32].mxu0 }
 0x136   :  { %v526_v15 = vadd.f32 %v1196_v10, %v1596_v51  ;;  %v517_v17 = vpop.f32.mrb[33].mxu0 }
 0x137   :  { %v518_v18 = vadd.f32 %v1596_v51, %v517_v17  ;;  %1262 = vmatprep.subr.bf16.mxu1 %v1261_v6  ;;  %v1197_v20 = vpop.f32.mrb[34].mxu0 }
 0x138   :  { %v678_v9 = vmax.f32 %v526_v15, 0.0  ;;  %v529_v21 = vadd.f32 %v1197_v20, %v1596_v51  ;;  %1264 = vmatpush3.bf16.msra.mxu1 %v1658_v45  ;;  %v520_v23 = vpop.f32.mrb[35].mxu0 }
 0x139   :  { %v521_v24 = vadd.f32 %v1596_v51, %v520_v23  ;;  %1266 = vmatprep.subr.bf16.mxu1 %v1265_v5  ;;  %v676_v7 = vmax.f32 %v518_v18, 0.0 }
 0x13a   :  { %v679_v25 = vmax.f32 %v529_v21, 0.0 }
 0x13b   :  { %v677_v26 = vmax.f32 %v521_v24, 0.0 }
 0x13c   :  { %v1275_v27 = vpack.c.bf16 %v679_v25, %v678_v9  ;;  %1268 = vmatpush3.bf16.msra.mxu1 %v1654_v39 }
 0x13d   :  { %v1271_v29 = vpack.c.bf16 %v677_v26, %v676_v7  ;;  %v1200_v30 = vpop.f32.mrb[36].mxu0  ;;  %1270 = vmatprep.subr.bf16.mxu1 %v1628_v44 }
 0x13e   :  { %v542_v31 = vadd.f32 %v1200_v30, %v1596_v51  ;;  %v533_v45 = vpop.f32.mrb[37].mxu0 }
 0x13f   :  { %v534_v32 = vadd.f32 %v1596_v51, %v533_v45  ;;  %v1201_v33 = vpop.f32.mrb[38].mxu0  ;;  %796 = vmatmul.mubr.f32.vlgmr.msra.gmra.mrb[20].mxu1 %v1587_v47 }
 0x140   :  { %v682_v34 = vmax.f32 %v542_v31, 0.0  ;;  %v545_v35 = vadd.f32 %v1201_v33, %v1596_v51  ;;  %1272 = vmatpush3.bf16.msra.mxu1 %v1271_v29  ;;  %v536_v39 = vpop.f32.mrb[39].mxu0  ;;  %865 = vmatprep.mubr.f32.mxu1 %v726_v28 }
 0x141   :  { %v537_v36 = vadd.f32 %v1596_v51, %v536_v39  ;;  %1274 = vmatprep.subr.bf16.mxu1 %v1624_v41  ;;  %v680_v44 = vmax.f32 %v534_v32, 0.0 }
 0x142   :  { %v683_v37 = vmax.f32 %v545_v35, 0.0 }
 0x143   :  { %v681_v38 = vmax.f32 %v537_v36, 0.0 }
 0x144   :  { %v1283_v46 = vpack.c.bf16 %v683_v37, %v682_v34  ;;  %1276 = vmatpush3.bf16.msra.mxu1 %v1275_v27 }
 0x145   :  { %v1279_v49 = vpack.c.bf16 %v681_v38, %v680_v44  ;;  %v1204_v14 = vpop.f32.mrb[40].mxu0  ;;  %1278 = vmatprep.subr.bf16.mxu1 %v1644_v11 }
 0x146   :  { %v558_v47 = vadd.f32 %v1204_v14, %v1596_v51  ;;  %v549_v52 = vpop.f32.mrb[41].mxu0 }
 0x147   :  { %v550_v53 = vadd.f32 %v1596_v51, %v549_v52  ;;  %v1205_v54 = vpop.f32.mrb[42].mxu0 }
 0x148   :  { %v686_v55 = vmax.f32 %v558_v47, 0.0  ;;  %v561_v12 = vadd.f32 %v1205_v54, %v1596_v51  ;;  %1280 = vmatpush3.bf16.msra.mxu1 %v1279_v49  ;;  %v552_v41 = vpop.f32.mrb[43].mxu0 }
 0x149   :  { %v553_v56 = vadd.f32 %v1596_v51, %v552_v41  ;;  %1282 = vmatprep.subr.bf16.mxu1 %v1640_v8  ;;  %v684_v58 = vmax.f32 %v550_v53, 0.0  ;;  %v871_v51 = vld [vmem:[%s1763_s4] sm:$0xff]  ;;  %v872_v8 = vld [vmem:[%s1763_s4 + $0x8] sm:$0xff] }
 0x14a   :  { %v687_v57 = vmax.f32 %v561_v12, 0.0 }
 0x14b   :  { %v685_v59 = vmax.f32 %v553_v56, 0.0 }
 0x14c   :  { %v1291_v60 = vpack.c.bf16 %v687_v57, %v686_v55  ;;  %1284 = vmatpush3.bf16.msra.mxu1 %v1283_v46 }
 0x14d   :  { %v1287_v11 = vpack.c.bf16 %v685_v59, %v684_v58  ;;  %1286 = vmatprep.subr.bf16.mxu1 %v1660_v48  ;;  %v1302_v48 = vpack.c.bf16 %v872_v8, %v871_v51 }
 0x150   :  { %1288 = vmatpush3.bf16.msra.mxu1 %v1287_v11 }
 0x151   :  { %1290 = vmatprep.subr.bf16.mxu1 %v1656_v43  ;;  %v1419_v43 = vmov 0.0|0.0  }
 0x154   :  { %1292 = vmatpush3.bf16.msra.mxu1 %v1291_v60 }
 0x155   :  { %1294 = vmatprep.subr.bf16.mxu1 %v1672_v22 }
 0x158   :  { %1296 = vmatpush3.bf16.msra.mxu1 %v1612_v16  ;;  %v873_v16 = vld [vmem:[%s1763_s4 + $0x10] sm:$0xff] }
 0x159   :  { %1298 = vmatprep.subr.bf16.mxu1 %v1670_v19  ;;  %v1421_v19 = vmov 0.0  }
 0x15c   :  { %1300 = vmatpush3.bf16.msra.mxu1 %v1608_v13 }
 0x15d   :  { %1301 = vmatprep.subr.bf16.mxu1 %v1419_v43 }
 0x15f   :  { %866 = vmatmul.mubr.f32.vlgmr.msra.gmra.mrb[22].mxu1 %v1591_v50  ;;  %v874_v50 = vld [vmem:[%s1763_s4 + $0x18] sm:$0xff]  ;;  %s1370_s4 = scalar_lea.vmem %s967_s19, 32 }
 0x160   :  { %1303 = vmatpush3.bf16.msra.mxu1 %v1302_v48  ;;  %v1305_v13 = vpack.c.bf16 %v874_v50, %v873_v16  ;;  %1234 = vmatprep.mubr.msk.f32.mxu1 %vm1420_vm0, %v1421_v19  ;;  %p1371_p0 = scmp.ne.s32.totalorder %s967_s19, %s1370_s4  ;;  %p1376_p2 = scmp.lt.s32.totalorder %s1370_s4, %s1370_s4 }
 0x161   :  { %1304 = vmatprep.subr.bf16.mxu1 %v1419_v43 }
 0x162   :  { %p1377_p3 = por %p1376_p2, %p1375_p1 }
 0x164   :  { %1306 = vmatpush3.bf16.msra.mxu1 %v1305_v13  ;;  %p1378_p4 = pnand %p1377_p3, %p1371_p0 }
 0x212   :  { %v1103_v22 = vpop.f32.mrb[20].mxu1 }
 0x213   :  { %v1104_v61 = vpop.f32.mrb[21].mxu1 }
 0x214   :  { %v1105_v62 = vadd.f32 %v1104_v61, %v1103_v22 }
 0x232   :  { %v1138_v63 = vpop.f32.mrb[22].mxu1 }
 0x233   :  { %v1139_v42 = vpop.f32.mrb[23].mxu1 }
 0x234   :  { %v1140_v0 = vadd.f32 %v1139_v42, %v1138_v63 }
 0x236   :  { %v868_v1 = vadd.f32 %v1140_v0, %v1105_v62 }
 0x238   :  { %1235 = vmatmul.mubr.msk.f32.vlgmr.msra.gmra.mrb[24].mxu1 %vm882_vm1, %v868_v1  ;;  %957 = vst.msk [vmem:[#allocation2] sm:$0x3] %vm956_vm2, %v868_v1 }
 0x239   :  { %1381 = shalt.err (!%p1378_p4)
}
 0x23a   :  { %s1382_s22 = scalar_lea.hbm %s1765_s6, 32 }
 0x23b   :  { %p1383_p5 = scmp.ne.s32.totalorder %s1765_s6, %s1382_s22  ;;  %p1386_p6 = scmp.lt.u32.totalorder %s1382_s22, %s1765_s6 }
 0x23d   :  { %p1388_p7 = pnand %p1386_p6, %p1383_p5 }
 0x23f   :  { %1391 = shalt.err (!%p1388_p7)
}
 0x240   :  { %969 = dma.vmem_to_hbm [thread:$0]  %s967_s19, 32, %s1765_s6, [#allocation3]   ;;  %v1029_v2 = vld [vmem:[%s1764_s5] ss:$0 sm:$0xff]  ;;  %vm958_vm3 = vcmask 33792  }
 0x241   :  { %s1423_s30 = smov [#allocation4]  }
 0x242   :  { %s976_s8 = sshll.u32 %s1423_s30, 4  ;;  %s977_s8 = int_to_ptr.vmem [resolvable:$true] %s976_s8 }
 0x243   :  { %s1392_s9 = scalar_lea.vmem %s977_s8, 32  ;;  %p1397_p9 = scmp.lt.s32.totalorder %s977_s8, %s977_s8 }
 0x244   :  { %p1393_p8 = scmp.ne.s32.totalorder %s977_s8, %s1392_s9  ;;  %p1398_p10 = scmp.lt.s32.totalorder %s1392_s9, %s1392_s9 }
 0x246   :  { %p1399_p11 = por %p1398_p10, %p1397_p9 }
 0x248   :  { %p1400_p12 = pnand %p1399_p11, %p1393_p8 }
 0x30b   :  { %v952_v3 = vpop.f32.mrb[24].mxu1 }
 0x30c   :  { %v953_v40 = vadd.f32 %v1029_v2, %v952_v3  ;;  %v1236_v4 = vpop.f32.mrb[25].mxu1 }
 0x30e   :  { %959 = vst.msk [vmem:[#allocation4] sm:$0x3] %vm958_vm3, %v953_v40 }
 0x30f   :  { %1403 = shalt.err (!%p1400_p12)
}
 0x310   :  { %s1404_s0 = scalar_lea.hbm %s1766_s7, 32 }
 0x311   :  { %p1405_p13 = scmp.ne.s32.totalorder %s1766_s7, %s1404_s0  ;;  %p1408_p0 = scmp.lt.u32.totalorder %s1404_s0, %s1766_s7 }
 0x313   :  { %p1410_p1 = pnand %p1408_p0, %p1405_p13 }
 0x315   :  { %1413 = shalt.err (!%p1410_p1)
}
 0x316   :  { %979 = dma.vmem_to_hbm [thread:$0]  %s977_s8, 32, %s1766_s7, [#allocation5]  }
 0x317   :  { %1414 = dma.done.wait [#allocation3], 32  }
 0x318   :  { %1415 = vsyncadd [#allocation3], 4294967264 }
 0x319   :  { %1416 = dma.done.wait [#allocation5], 32  }
 0x31a   :  { %1417 = vsyncadd [#allocation5], 4294967264 }
 0x31b   :  { %986 = vsyncpa [#allocation3], 1 }
 0x31c   :  { %987 = vsyncpa [#allocation5], 1 }

</bundles_post_ra>
